<compile_context>
chip_gen: v7x
topology: tpu7x:2x2x1
jax: 0.10.0
libtpu: 0.0.40
codegen_flags: <defaults>
</compile_context>

<pallas_src>
import functools

import jax
import jax.numpy as jnp
from jax import lax
from jax.experimental import pallas as pl
from jax.experimental.pallas import tpu as pltpu

_BN_EPS = 1e-5
_NORM_EPS_SQ = 1e-24       # (F.normalize eps=1e-12)^2, clamped on the squared norm
_SLAB_LANES = 128          # lane-dense output width


def _bn_train(z, gamma=None, beta=None):
    """BatchNorm1d with training batch statistics (single-pass sum / sum-of-squares).

    NOTE: var = E[x^2] - mu^2 can lose precision when |mean| >> std; fine at these scales,
    switch to the two-pass form for the paper-scale path.
    """
    n = z.shape[0]
    inv_n = 1.0 / float(n)
    s = jnp.sum(z, axis=0, keepdims=True)
    ss = jnp.sum(z * z, axis=0, keepdims=True)
    mu = s * inv_n
    var = jnp.maximum(ss * inv_n - mu * mu, 0.0)       # biased var (PyTorch BN normalization)
    zhat = (z - mu) * lax.rsqrt(var + _BN_EPS)
    if gamma is not None:
        zhat = zhat * gamma + beta                      # gamma/beta pre-broadcast to [n, H]
    return zhat


def _l2_normalize(v):
    return v * lax.rsqrt(jnp.maximum(jnp.sum(v * v, axis=1, keepdims=True), _NORM_EPS_SQ))


def _ce_sum(qn, kn, inv_t, stabilize):
    """sum_i (logsumexp_j(qn_i.kn_j / T) - qn_i.kn_i / T), as a [1,1] value (inputs pre-normalized)."""
    # MXU contraction over the feature axis of BOTH operands (no explicit transpose of kn).
    logits = lax.dot_general(qn, kn, (((1,), (1,)), ((), ())),
                             preferred_element_type=jnp.float32) * inv_t       # [N, N]
    # Diagonal directly as rowwise q.k (VPU) -- tiny accumulation-order difference vs. the MXU
    # logits diagonal is within f32 tolerance.
    diag = jnp.sum(qn * kn, axis=1, keepdims=True) * inv_t                     # [N, 1]
    if stabilize:   # only needed for pathological T; |logits| <= 1/T for unit-norm inputs
        m = jnp.max(logits, axis=1, keepdims=True)
        lse = m + jnp.log(jnp.sum(jnp.exp(logits - m), axis=1, keepdims=True))
    else:
        lse = jnp.log(jnp.sum(jnp.exp(logits), axis=1, keepdims=True))         # [N, 1]
    return jnp.sum(lse - diag, axis=0, keepdims=True)                          # [1, 1]


def moco_fused_kernel(pa_ref, pw_ref, pb_ref, out_ref, *, N, F, D, H, T):
    # ---- unpack the three input slabs (all slice offsets/sizes are multiples of 8 rows) ----
    pa = pa_ref[...]                        # [3N, F]  = [x; mask1; mask2]
    x, m1, m2 = pa[0:N], pa[N:2 * N], pa[2 * N:3 * N]
    pw = pw_ref[...]                        # [F+H, D] = [w_enc; w2]
    w_enc, w2 = pw[0:F], pw[F:F + H]
    pb = pb_ref[...]                        # [D+2N, H] = [w1; gamma(bcast N rows); beta(bcast N rows)]
    w1, g1, b1 = pb[0:D], pb[D:D + N], pb[D + N:D + 2 * N]

    # ---- both views through one stacked forward (3 matmuls instead of 6) ----
    xm = jnp.concatenate([x * m1, x * m2], axis=0)                             # [2N, F]
    h = jnp.dot(xm, w_enc, preferred_element_type=jnp.float32)                 # [2N, D]  (k1 ; k2)
    z1 = jnp.dot(h, w1, preferred_element_type=jnp.float32)                    # [2N, H]
    # Per-view BatchNorm (training batch stats of each 8-row view block) + ReLU, restacked.
    z1r = jnp.concatenate(
        [jnp.maximum(_bn_train(z1[0:N], g1, b1), 0.0),
         jnp.maximum(_bn_train(z1[N:2 * N], g1, b1), 0.0)], axis=0)            # [2N, H]
    z2 = jnp.dot(z1r, w2, preferred_element_type=jnp.float32)                  # [2N, D]
    q1 = _bn_train(z2[0:N])                                                    # [N, D]
    q2 = _bn_train(z2[N:2 * N])                                                # [N, D]

    # ---- symmetric contrastive loss (k1/k2 never leave VMEM) ----
    hn = _l2_normalize(h)                                                      # normalize both keys at once
    k1n, k2n = hn[0:N], hn[N:2 * N]
    q1n, q2n = _l2_normalize(q1), _l2_normalize(q2)

    inv_t = 1.0 / T
    stabilize = T < 0.02                    # static: unit-norm logits bounded by 1/T
    loss = (_ce_sum(q1n, k2n, inv_t, stabilize)
            + _ce_sum(q2n, k1n, inv_t, stabilize)) * (2.0 * T / float(N))      # [1, 1]

    # ---- single lane-dense (N, 128) output slab, one unmasked 128-lane store ----
    slab = jnp.concatenate(
        [q1, q2, jnp.broadcast_to(loss, (N, _SLAB_LANES - 2 * D))], axis=1)    # [N, 128]
    out_ref[...] = slab


def pack_moco_params(params, N):
    """Pre-pack weights outside jit: 2 weight slabs instead of 5 separate HBM->VMEM DMAs."""
    w_enc, w1, w2 = params["w_enc"], params["w1"], params["w2"]
    g1, b1 = params["g1"], params["b1"]
    H = w1.shape[1]
    pw = jnp.concatenate([w_enc, w2], axis=0)                                  # [F+H, D]
    pb = jnp.concatenate([w1,
                          jnp.broadcast_to(g1, (N, H)),
                          jnp.broadcast_to(b1, (N, H))], axis=0)               # [D+2N, H]
    return pw, pb


@functools.partial(jax.jit, static_argnames=("T",))
def moco_forward(x, mask1, mask2, pw, pb, T=1.0):
    N, F = x.shape
    D = pw.shape[1]
    H = pb.shape[1]
    assert N % 8 == 0 and F % 8 == 0 and D % 8 == 0 and H % 8 == 0
    assert pw.shape[0] == F + H and pb.shape[0] == D + 2 * N
    assert 2 * D + 1 <= _SLAB_LANES, "slab layout assumes small dim; see paper-scale TODO"

    # One [3N, F] input slab for the per-batch tensors (mask multiply stays inside the kernel).
    pa = jnp.concatenate([x, mask1, mask2], axis=0)

    flops = 2 * (2 * N * F * D + 2 * N * D * H + 2 * N * H * D + 2 * N * N * D)
    transcendentals = 2 * N * N + 6 * N + 2 * (H + D)
    bytes_accessed = 4 * (3 * N * F + (F + H) * D + (D + 2 * N) * H + N * _SLAB_LANES)

    vmem = pl.BlockSpec(memory_space=pltpu.MemorySpace.VMEM)
    slab = pl.pallas_call(
        functools.partial(moco_fused_kernel, N=N, F=F, D=D, H=H, T=T),
        out_shape=jax.ShapeDtypeStruct((N, _SLAB_LANES), jnp.float32),
        in_specs=[vmem, vmem, vmem],
        out_specs=vmem,
        cost_estimate=pl.CostEstimate(flops=flops,
                                      transcendentals=transcendentals,
                                      bytes_accessed=bytes_accessed),
    )(pa, pw, pb)

    q1 = slab[:, 0:D]
    q2 = slab[:, D:2 * D]
    loss = slab[0, 2 * D]
    return q1, q2, loss


if __name__ == "__main__":
    # Small synthetic shapes consistent with the module (dim=256 / mlp_dim=1024 in the paper).
    N = 8         # batch of drugs
    F = 32        # raw feature dim fed to the (synthetic) base encoder
    DIM = 32      # MoCo feature dim
    MLP_DIM = 64  # MoCo MLP hidden dim
    T = 1.0

    key = jax.random.PRNGKey(0)
    kx, km1, km2, kwe, kw1, kw2 = jax.random.split(key, 6)

    x = jax.random.normal(kx, (N, F), dtype=jnp.float32)
    mask1 = jax.random.bernoulli(km1, 0.7, (N, F)).astype(jnp.float32)
    mask2 = jax.random.bernoulli(km2, 0.7, (N, F)).astype(jnp.float32)

    params = {
        "w_enc": 0.1 * jax.random.normal(kwe, (F, DIM), dtype=jnp.float32),
        "w1": 0.1 * jax.random.normal(kw1, (DIM, MLP_DIM), dtype=jnp.float32),
        "g1": jnp.ones((1, MLP_DIM), dtype=jnp.float32),    # BN affine weight
        "b1": jnp.zeros((1, MLP_DIM), dtype=jnp.float32),   # BN affine bias
        "w2": 0.1 * jax.random.normal(kw2, (MLP_DIM, DIM), dtype=jnp.float32),
    }
    pw, pb = pack_moco_params(params, N)     # weight packing done once, outside jit

    q1, q2, loss = moco_forward(x, mask1, mask2, pw, pb, T=T)
    jax.block_until_ready((q1, q2, loss))

    assert q1.shape == (N, DIM) and q2.shape == (N, DIM)
    assert bool(jnp.isfinite(loss))
    print("KERNEL_OK")
</pallas_src>

<mosaic_0001>
module attributes {stable_mosaic.version = 11 : i64} {
  func.func @moco_fused_kernel(%arg0: memref<24x32xf32, #tpu.memory_space<vmem>>, %arg1: memref<96x32xf32, #tpu.memory_space<vmem>>, %arg2: memref<48x64xf32, #tpu.memory_space<vmem>>, %arg3: memref<8x128xf32, #tpu.memory_space<vmem>>) attributes {dimension_semantics = [], scalar_prefetch = 0 : i64, scratch_operands = 0 : i64, tpu.core_type = #tpu.core_type<tc>} {
    %c0 = arith.constant 0 : index
    %c0_0 = arith.constant 0 : index
    %0 = vector.load %arg0[%c0, %c0_0] : memref<24x32xf32, #tpu.memory_space<vmem>>, vector<24x32xf32>
    %1 = vector.extract_strided_slice %0 {offsets = [0, 0], sizes = [8, 32], strides = [1, 1]} : vector<24x32xf32> to vector<8x32xf32>
    %2 = vector.extract_strided_slice %0 {offsets = [8, 0], sizes = [8, 32], strides = [1, 1]} : vector<24x32xf32> to vector<8x32xf32>
    %3 = vector.extract_strided_slice %0 {offsets = [16, 0], sizes = [8, 32], strides = [1, 1]} : vector<24x32xf32> to vector<8x32xf32>
    %c0_1 = arith.constant 0 : index
    %c0_2 = arith.constant 0 : index
    %4 = vector.load %arg1[%c0_1, %c0_2] : memref<96x32xf32, #tpu.memory_space<vmem>>, vector<96x32xf32>
    %5 = vector.extract_strided_slice %4 {offsets = [0, 0], sizes = [32, 32], strides = [1, 1]} : vector<96x32xf32> to vector<32x32xf32>
    %6 = vector.extract_strided_slice %4 {offsets = [32, 0], sizes = [64, 32], strides = [1, 1]} : vector<96x32xf32> to vector<64x32xf32>
    %c0_3 = arith.constant 0 : index
    %c0_4 = arith.constant 0 : index
    %7 = vector.load %arg2[%c0_3, %c0_4] : memref<48x64xf32, #tpu.memory_space<vmem>>, vector<48x64xf32>
    %8 = vector.extract_strided_slice %7 {offsets = [0, 0], sizes = [32, 64], strides = [1, 1]} : vector<48x64xf32> to vector<32x64xf32>
    %9 = vector.extract_strided_slice %7 {offsets = [32, 0], sizes = [8, 64], strides = [1, 1]} : vector<48x64xf32> to vector<8x64xf32>
    %10 = vector.extract_strided_slice %7 {offsets = [40, 0], sizes = [8, 64], strides = [1, 1]} : vector<48x64xf32> to vector<8x64xf32>
    %11 = arith.mulf %1, %2 : vector<8x32xf32>
    %12 = arith.mulf %1, %3 : vector<8x32xf32>
    %13 = tpu.concatenate %11, %12 in 0 : vector<8x32xf32>, vector<8x32xf32> -> vector<16x32xf32>
    %cst = arith.constant dense<0.000000e+00> : vector<16x32xf32>
    %14 = tpu.matmul %13, %5, %cst {dimension_numbers = #tpu.dot_dimension_numbers<[1], [0], [0], [1], [0, 0, 1, 1], [], []>} : vector<16x32xf32>, vector<32x32xf32>, vector<16x32xf32> -> vector<16x32xf32>
    %cst_5 = arith.constant dense<0.000000e+00> : vector<16x64xf32>
    %15 = tpu.matmul %14, %8, %cst_5 {dimension_numbers = #tpu.dot_dimension_numbers<[1], [0], [0], [1], [0, 0, 1, 1], [], []>} : vector<16x32xf32>, vector<32x64xf32>, vector<16x64xf32> -> vector<16x64xf32>
    %16 = vector.extract_strided_slice %15 {offsets = [0, 0], sizes = [8, 64], strides = [1, 1]} : vector<16x64xf32> to vector<8x64xf32>
    %cst_6 = arith.constant dense<0.000000e+00> : vector<64xf32>
    %17 = vector.multi_reduction <add>, %16, %cst_6 [0] : vector<8x64xf32> to vector<64xf32>
    %18 = vector.shape_cast %17 : vector<64xf32> to vector<1x64xf32>
    %19 = arith.mulf %16, %16 : vector<8x64xf32>
    %cst_7 = arith.constant dense<0.000000e+00> : vector<64xf32>
    %20 = vector.multi_reduction <add>, %19, %cst_7 [0] : vector<8x64xf32> to vector<64xf32>
    %21 = vector.shape_cast %20 : vector<64xf32> to vector<1x64xf32>
    %cst_8 = arith.constant 1.250000e-01 : f32
    %22 = vector.broadcast %cst_8 : f32 to vector<1x64xf32>
    %23 = arith.mulf %18, %22 : vector<1x64xf32>
    %cst_9 = arith.constant 1.250000e-01 : f32
    %24 = vector.broadcast %cst_9 : f32 to vector<1x64xf32>
    %25 = arith.mulf %21, %24 : vector<1x64xf32>
    %26 = arith.mulf %23, %23 : vector<1x64xf32>
    %27 = arith.subf %25, %26 : vector<1x64xf32>
    %cst_10 = arith.constant 0.000000e+00 : f32
    %28 = vector.broadcast %cst_10 : f32 to vector<1x64xf32>
    %29 = arith.maximumf %27, %28 : vector<1x64xf32>
    %30 = vector.broadcast %23 : vector<1x64xf32> to vector<8x64xf32>
    %31 = arith.subf %16, %30 : vector<8x64xf32>
    %cst_11 = arith.constant 9.99999974E-6 : f32
    %32 = vector.broadcast %cst_11 : f32 to vector<1x64xf32>
    %33 = arith.addf %29, %32 : vector<1x64xf32>
    %34 = math.rsqrt %33 : vector<1x64xf32>
    %35 = vector.broadcast %34 : vector<1x64xf32> to vector<8x64xf32>
    %36 = arith.mulf %31, %35 : vector<8x64xf32>
    %37 = arith.mulf %36, %9 : vector<8x64xf32>
    %38 = arith.addf %37, %10 : vector<8x64xf32>
    %cst_12 = arith.constant 0.000000e+00 : f32
    %39 = vector.broadcast %cst_12 : f32 to vector<8x64xf32>
    %40 = arith.maximumf %38, %39 : vector<8x64xf32>
    %41 = vector.extract_strided_slice %15 {offsets = [8, 0], sizes = [8, 64], strides = [1, 1]} : vector<16x64xf32> to vector<8x64xf32>
    %cst_13 = arith.constant dense<0.000000e+00> : vector<64xf32>
    %42 = vector.multi_reduction <add>, %41, %cst_13 [0] : vector<8x64xf32> to vector<64xf32>
    %43 = vector.shape_cast %42 : vector<64xf32> to vector<1x64xf32>
    %44 = arith.mulf %41, %41 : vector<8x64xf32>
    %cst_14 = arith.constant dense<0.000000e+00> : vector<64xf32>
    %45 = vector.multi_reduction <add>, %44, %cst_14 [0] : vector<8x64xf32> to vector<64xf32>
    %46 = vector.shape_cast %45 : vector<64xf32> to vector<1x64xf32>
    %cst_15 = arith.constant 1.250000e-01 : f32
    %47 = vector.broadcast %cst_15 : f32 to vector<1x64xf32>
    %48 = arith.mulf %43, %47 : vector<1x64xf32>
    %cst_16 = arith.constant 1.250000e-01 : f32
    %49 = vector.broadcast %cst_16 : f32 to vector<1x64xf32>
    %50 = arith.mulf %46, %49 : vector<1x64xf32>
    %51 = arith.mulf %48, %48 : vector<1x64xf32>
    %52 = arith.subf %50, %51 : vector<1x64xf32>
    %cst_17 = arith.constant 0.000000e+00 : f32
    %53 = vector.broadcast %cst_17 : f32 to vector<1x64xf32>
    %54 = arith.maximumf %52, %53 : vector<1x64xf32>
    %55 = vector.broadcast %48 : vector<1x64xf32> to vector<8x64xf32>
    %56 = arith.subf %41, %55 : vector<8x64xf32>
    %cst_18 = arith.constant 9.99999974E-6 : f32
    %57 = vector.broadcast %cst_18 : f32 to vector<1x64xf32>
    %58 = arith.addf %54, %57 : vector<1x64xf32>
    %59 = math.rsqrt %58 : vector<1x64xf32>
    %60 = vector.broadcast %59 : vector<1x64xf32> to vector<8x64xf32>
    %61 = arith.mulf %56, %60 : vector<8x64xf32>
    %62 = arith.mulf %61, %9 : vector<8x64xf32>
    %63 = arith.addf %62, %10 : vector<8x64xf32>
    %cst_19 = arith.constant 0.000000e+00 : f32
    %64 = vector.broadcast %cst_19 : f32 to vector<8x64xf32>
    %65 = arith.maximumf %63, %64 : vector<8x64xf32>
    %66 = tpu.concatenate %40, %65 in 0 : vector<8x64xf32>, vector<8x64xf32> -> vector<16x64xf32>
    %cst_20 = arith.constant dense<0.000000e+00> : vector<16x32xf32>
    %67 = tpu.matmul %66, %6, %cst_20 {dimension_numbers = #tpu.dot_dimension_numbers<[1], [0], [0], [1], [0, 0, 1, 1], [], []>} : vector<16x64xf32>, vector<64x32xf32>, vector<16x32xf32> -> vector<16x32xf32>
    %68 = vector.extract_strided_slice %67 {offsets = [0, 0], sizes = [8, 32], strides = [1, 1]} : vector<16x32xf32> to vector<8x32xf32>
    %cst_21 = arith.constant dense<0.000000e+00> : vector<32xf32>
    %69 = vector.multi_reduction <add>, %68, %cst_21 [0] : vector<8x32xf32> to vector<32xf32>
    %70 = vector.shape_cast %69 : vector<32xf32> to vector<1x32xf32>
    %71 = arith.mulf %68, %68 : vector<8x32xf32>
    %cst_22 = arith.constant dense<0.000000e+00> : vector<32xf32>
    %72 = vector.multi_reduction <add>, %71, %cst_22 [0] : vector<8x32xf32> to vector<32xf32>
    %73 = vector.shape_cast %72 : vector<32xf32> to vector<1x32xf32>
    %cst_23 = arith.constant 1.250000e-01 : f32
    %74 = vector.broadcast %cst_23 : f32 to vector<1x32xf32>
    %75 = arith.mulf %70, %74 : vector<1x32xf32>
    %cst_24 = arith.constant 1.250000e-01 : f32
    %76 = vector.broadcast %cst_24 : f32 to vector<1x32xf32>
    %77 = arith.mulf %73, %76 : vector<1x32xf32>
    %78 = arith.mulf %75, %75 : vector<1x32xf32>
    %79 = arith.subf %77, %78 : vector<1x32xf32>
    %cst_25 = arith.constant 0.000000e+00 : f32
    %80 = vector.broadcast %cst_25 : f32 to vector<1x32xf32>
    %81 = arith.maximumf %79, %80 : vector<1x32xf32>
    %82 = vector.broadcast %75 : vector<1x32xf32> to vector<8x32xf32>
    %83 = arith.subf %68, %82 : vector<8x32xf32>
    %cst_26 = arith.constant 9.99999974E-6 : f32
    %84 = vector.broadcast %cst_26 : f32 to vector<1x32xf32>
    %85 = arith.addf %81, %84 : vector<1x32xf32>
    %86 = math.rsqrt %85 : vector<1x32xf32>
    %87 = vector.broadcast %86 : vector<1x32xf32> to vector<8x32xf32>
    %88 = arith.mulf %83, %87 : vector<8x32xf32>
    %89 = vector.extract_strided_slice %67 {offsets = [8, 0], sizes = [8, 32], strides = [1, 1]} : vector<16x32xf32> to vector<8x32xf32>
    %cst_27 = arith.constant dense<0.000000e+00> : vector<32xf32>
    %90 = vector.multi_reduction <add>, %89, %cst_27 [0] : vector<8x32xf32> to vector<32xf32>
    %91 = vector.shape_cast %90 : vector<32xf32> to vector<1x32xf32>
    %92 = arith.mulf %89, %89 : vector<8x32xf32>
    %cst_28 = arith.constant dense<0.000000e+00> : vector<32xf32>
    %93 = vector.multi_reduction <add>, %92, %cst_28 [0] : vector<8x32xf32> to vector<32xf32>
    %94 = vector.shape_cast %93 : vector<32xf32> to vector<1x32xf32>
    %cst_29 = arith.constant 1.250000e-01 : f32
    %95 = vector.broadcast %cst_29 : f32 to vector<1x32xf32>
    %96 = arith.mulf %91, %95 : vector<1x32xf32>
    %cst_30 = arith.constant 1.250000e-01 : f32
    %97 = vector.broadcast %cst_30 : f32 to vector<1x32xf32>
    %98 = arith.mulf %94, %97 : vector<1x32xf32>
    %99 = arith.mulf %96, %96 : vector<1x32xf32>
    %100 = arith.subf %98, %99 : vector<1x32xf32>
    %cst_31 = arith.constant 0.000000e+00 : f32
    %101 = vector.broadcast %cst_31 : f32 to vector<1x32xf32>
    %102 = arith.maximumf %100, %101 : vector<1x32xf32>
    %103 = vector.broadcast %96 : vector<1x32xf32> to vector<8x32xf32>
    %104 = arith.subf %89, %103 : vector<8x32xf32>
    %cst_32 = arith.constant 9.99999974E-6 : f32
    %105 = vector.broadcast %cst_32 : f32 to vector<1x32xf32>
    %106 = arith.addf %102, %105 : vector<1x32xf32>
    %107 = math.rsqrt %106 : vector<1x32xf32>
    %108 = vector.broadcast %107 : vector<1x32xf32> to vector<8x32xf32>
    %109 = arith.mulf %104, %108 : vector<8x32xf32>
    %110 = arith.mulf %14, %14 : vector<16x32xf32>
    %cst_33 = arith.constant dense<0.000000e+00> : vector<16xf32>
    %111 = vector.multi_reduction <add>, %110, %cst_33 [1] : vector<16x32xf32> to vector<16xf32>
    %112 = vector.shape_cast %111 : vector<16xf32> to vector<16x1xf32>
    %cst_34 = arith.constant 1.000000e-24 : f32
    %113 = vector.broadcast %cst_34 : f32 to vector<16x1xf32>
    %114 = arith.maximumf %112, %113 : vector<16x1xf32>
    %115 = math.rsqrt %114 : vector<16x1xf32>
    %116 = vector.broadcast %115 : vector<16x1xf32> to vector<16x32xf32>
    %117 = arith.mulf %14, %116 : vector<16x32xf32>
    %118 = vector.extract_strided_slice %117 {offsets = [0, 0], sizes = [8, 32], strides = [1, 1]} : vector<16x32xf32> to vector<8x32xf32>
    %119 = vector.extract_strided_slice %117 {offsets = [8, 0], sizes = [8, 32], strides = [1, 1]} : vector<16x32xf32> to vector<8x32xf32>
    %120 = arith.mulf %88, %88 : vector<8x32xf32>
    %cst_35 = arith.constant dense<0.000000e+00> : vector<8xf32>
    %121 = vector.multi_reduction <add>, %120, %cst_35 [1] : vector<8x32xf32> to vector<8xf32>
    %122 = vector.shape_cast %121 : vector<8xf32> to vector<8x1xf32>
    %cst_36 = arith.constant 1.000000e-24 : f32
    %123 = vector.broadcast %cst_36 : f32 to vector<8x1xf32>
    %124 = arith.maximumf %122, %123 : vector<8x1xf32>
    %125 = math.rsqrt %124 : vector<8x1xf32>
    %126 = vector.broadcast %125 : vector<8x1xf32> to vector<8x32xf32>
    %127 = arith.mulf %88, %126 : vector<8x32xf32>
    %128 = arith.mulf %109, %109 : vector<8x32xf32>
    %cst_37 = arith.constant dense<0.000000e+00> : vector<8xf32>
    %129 = vector.multi_reduction <add>, %128, %cst_37 [1] : vector<8x32xf32> to vector<8xf32>
    %130 = vector.shape_cast %129 : vector<8xf32> to vector<8x1xf32>
    %cst_38 = arith.constant 1.000000e-24 : f32
    %131 = vector.broadcast %cst_38 : f32 to vector<8x1xf32>
    %132 = arith.maximumf %130, %131 : vector<8x1xf32>
    %133 = math.rsqrt %132 : vector<8x1xf32>
    %134 = vector.broadcast %133 : vector<8x1xf32> to vector<8x32xf32>
    %135 = arith.mulf %109, %134 : vector<8x32xf32>
    %cst_39 = arith.constant dense<0.000000e+00> : vector<8x8xf32>
    %136 = tpu.matmul %127, %119, %cst_39 {dimension_numbers = #tpu.dot_dimension_numbers<[1], [1], [0], [0], [0, 0, 1, 0], [], []>} : vector<8x32xf32>, vector<8x32xf32>, vector<8x8xf32> -> vector<8x8xf32>
    %cst_40 = arith.constant 1.000000e+00 : f32
    %137 = vector.broadcast %cst_40 : f32 to vector<8x8xf32>
    %138 = arith.mulf %136, %137 : vector<8x8xf32>
    %139 = arith.mulf %127, %119 : vector<8x32xf32>
    %cst_41 = arith.constant dense<0.000000e+00> : vector<8xf32>
    %140 = vector.multi_reduction <add>, %139, %cst_41 [1] : vector<8x32xf32> to vector<8xf32>
    %141 = vector.shape_cast %140 : vector<8xf32> to vector<8x1xf32>
    %cst_42 = arith.constant 1.000000e+00 : f32
    %142 = vector.broadcast %cst_42 : f32 to vector<8x1xf32>
    %143 = arith.mulf %141, %142 : vector<8x1xf32>
    %144 = math.exp %138 : vector<8x8xf32>
    %cst_43 = arith.constant dense<0.000000e+00> : vector<8xf32>
    %145 = vector.multi_reduction <add>, %144, %cst_43 [1] : vector<8x8xf32> to vector<8xf32>
    %146 = vector.shape_cast %145 : vector<8xf32> to vector<8x1xf32>
    %147 = math.log %146 : vector<8x1xf32>
    %148 = arith.subf %147, %143 : vector<8x1xf32>
    %cst_44 = arith.constant dense<0.000000e+00> : vector<1xf32>
    %149 = vector.multi_reduction <add>, %148, %cst_44 [0] : vector<8x1xf32> to vector<1xf32>
    %150 = vector.shape_cast %149 : vector<1xf32> to vector<1x1xf32>
    %cst_45 = arith.constant dense<0.000000e+00> : vector<8x8xf32>
    %151 = tpu.matmul %135, %118, %cst_45 {dimension_numbers = #tpu.dot_dimension_numbers<[1], [1], [0], [0], [0, 0, 1, 0], [], []>} : vector<8x32xf32>, vector<8x32xf32>, vector<8x8xf32> -> vector<8x8xf32>
    %cst_46 = arith.constant 1.000000e+00 : f32
    %152 = vector.broadcast %cst_46 : f32 to vector<8x8xf32>
    %153 = arith.mulf %151, %152 : vector<8x8xf32>
    %154 = arith.mulf %135, %118 : vector<8x32xf32>
    %cst_47 = arith.constant dense<0.000000e+00> : vector<8xf32>
    %155 = vector.multi_reduction <add>, %154, %cst_47 [1] : vector<8x32xf32> to vector<8xf32>
    %156 = vector.shape_cast %155 : vector<8xf32> to vector<8x1xf32>
    %cst_48 = arith.constant 1.000000e+00 : f32
    %157 = vector.broadcast %cst_48 : f32 to vector<8x1xf32>
    %158 = arith.mulf %156, %157 : vector<8x1xf32>
    %159 = math.exp %153 : vector<8x8xf32>
    %cst_49 = arith.constant dense<0.000000e+00> : vector<8xf32>
    %160 = vector.multi_reduction <add>, %159, %cst_49 [1] : vector<8x8xf32> to vector<8xf32>
    %161 = vector.shape_cast %160 : vector<8xf32> to vector<8x1xf32>
    %162 = math.log %161 : vector<8x1xf32>
    %163 = arith.subf %162, %158 : vector<8x1xf32>
    %cst_50 = arith.constant dense<0.000000e+00> : vector<1xf32>
    %164 = vector.multi_reduction <add>, %163, %cst_50 [0] : vector<8x1xf32> to vector<1xf32>
    %165 = vector.shape_cast %164 : vector<1xf32> to vector<1x1xf32>
    %166 = arith.addf %150, %165 : vector<1x1xf32>
    %cst_51 = arith.constant 2.500000e-01 : f32
    %167 = vector.broadcast %cst_51 : f32 to vector<1x1xf32>
    %168 = arith.mulf %166, %167 : vector<1x1xf32>
    %169 = vector.shape_cast %168 : vector<1x1xf32> to vector<1x1xf32>
    %170 = vector.broadcast %169 : vector<1x1xf32> to vector<8x64xf32>
    %171 = tpu.concatenate %88, %109, %170 in 1 : vector<8x32xf32>, vector<8x32xf32>, vector<8x64xf32> -> vector<8x128xf32>
    %c0_52 = arith.constant 0 : index
    %c0_53 = arith.constant 0 : index
    %172 = vector.load %arg3[%c0_52, %c0_53] : memref<8x128xf32, #tpu.memory_space<vmem>>, vector<8x128xf32>
    tpu.vector_store %arg3[%c0_52, %c0_53], %171 {strides = array<i32>} : memref<8x128xf32, #tpu.memory_space<vmem>>, vector<8x128xf32>,
    return
  }
}

</mosaic_0001>

<bundles_post_ra>
// kernel: moco_forward.1
= control target key start
LH: loop header
LB: loop body
LE: loop exit
PB: predicated region body
PF: predicated region fallthrough
CT: control target
= control target key end

     0   :  { %vm37_vm0 = vcmask 261120   ;;  %v760_v23 = vmov 0.0   ;;  %vm200_vm1 = vcmask 523264   ;;  %vm761_vm2 = vmmov 0   ;;  %s897_s1 = inlined_call_operand.vmem [shape: f32[96,32], index: 1, kind: input, shape index: {}]   ;;  %s898_s0 = inlined_call_operand.vmem [shape: f32[24,32], index: 0, kind: input, shape index: {}]   ;;  %s899_s2 = inlined_call_operand.vmem [shape: f32[48,64], index: 2, kind: input, shape index: {}]   ;;  %s900_s3 = inlined_call_operand.vmem [shape: f32[8,128], index: 3, kind: output, shape index: {}]  }
   0x1   :  { %v17_v0 = vld [vmem:[%s897_s1] sm:$0xff]  ;;  %v18_v1 = vld [vmem:[%s897_s1 + $0x8] sm:$0xff]  ;;  %v19_v2 = vld [vmem:[%s897_s1 + $0x10] sm:$0xff]  ;;  %vm494_vm3 = vcmask 64512  }
   0x2   :  { %v701_v3 = vpack.c.bf16 %v18_v1, %v17_v0  ;;  %v20_v4 = vld [vmem:[%s897_s1 + $0x18] sm:$0xff]  ;;  %v14_v5 = vld [vmem:[%s898_s0] sm:$0xff]  ;;  %v15_v6 = vld [vmem:[%s898_s0 + $0x8] sm:$0xff] }
   0x3   :  { %v705_v7 = vpack.c.bf16 %v20_v4, %v19_v2  ;;  %v35_v8 = vmul.f32 %v15_v6, %v14_v5  ;;  %v29_v9 = vld [vmem:[%s899_s2] sm:$0xff]  ;;  %v30_v10 = vld [vmem:[%s899_s2 + $0x8] sm:$0xff]  ;;  %v31_v12 = vld [vmem:[%s899_s2 + $0x10] sm:$0xff] }
   0x4   :  { %702 = vmatprep.subr.bf16.mxu0 %v701_v3  ;;  %v709_v11 = vpack.c.bf16 %v30_v10, %v29_v9  ;;  %v32_v13 = vld [vmem:[%s899_s2 + $0x18] sm:$0xff]  ;;  %v16_v14 = vld [vmem:[%s898_s0 + $0x10] sm:$0xff]  ;;  %v21_v24 = vld [vmem:[%s897_s1 + $0x20] sm:$0xff] }
   0x5   :  { %704 = vmatpush3.bf16.msra.mxu0 %v701_v3  ;;  %658 = vmatprep.mubr.msk.f32.mxu0 %vm37_vm0, %v35_v8  ;;  %v713_v15 = vpack.c.bf16 %v32_v13, %v31_v12  ;;  %v36_v16 = vmul.f32 %v16_v14, %v14_v5  ;;  %v22_v25 = vld [vmem:[%s897_s1 + $0x28] sm:$0xff]  ;;  %v23_v27 = vld [vmem:[%s897_s1 + $0x30] sm:$0xff]  ;;  %v24_v28 = vld [vmem:[%s897_s1 + $0x38] sm:$0xff] }
   0x6   :  { %706 = vmatprep.subr.bf16.mxu0 %v705_v7  ;;  %710 = vmatprep.subr.bf16.mxu1 %v709_v11  ;;  %v717_v26 = vpack.c.bf16 %v22_v25, %v21_v24  ;;  %v721_v29 = vpack.c.bf16 %v24_v28, %v23_v27  ;;  %v25_v30 = vld [vmem:[%s897_s1 + $0x40] sm:$0xff]  ;;  %v26_v31 = vld [vmem:[%s897_s1 + $0x48] sm:$0xff]  ;;  %v27_v33 = vld [vmem:[%s897_s1 + $0x50] sm:$0xff] }
   0x7   :  { %712 = vmatpush3.bf16.msra.mxu1 %v709_v11  ;;  %v725_v32 = vpack.c.bf16 %v26_v31, %v25_v30  ;;  %v28_v34 = vld [vmem:[%s897_s1 + $0x58] sm:$0xff]  ;;  %v33_v24 = vld [vmem:[%s899_s2 + $0x20] sm:$0xff] }
   0x8   :  { %714 = vmatprep.subr.bf16.mxu1 %v713_v15  ;;  %v729_v35 = vpack.c.bf16 %v28_v34, %v27_v33 }
   0x9   :  { %708 = vmatpush3.bf16.msra.mxu0 %v705_v7 }
   0xa   :  { %718 = vmatprep.subr.bf16.mxu0 %v717_v26 }
   0xb   :  { %716 = vmatpush3.bf16.msra.mxu1 %v713_v15 }
   0xc   :  { %659 = vmatmul.mubr.msk.f32.vlgmr.msra.gmra.mrb[0].mxu0 %vm37_vm0, %v36_v16  ;;  %691 = vmatprep.subr.mxu1 %v760_v23 }
   0xd   :  { %720 = vmatpush3.bf16.msra.mxu0 %v717_v26 }
   0xe   :  { %722 = vmatprep.subr.bf16.mxu0 %v721_v29 }
  0x11   :  { %724 = vmatpush3.bf16.msra.mxu0 %v721_v29  ;;  %v34_v29 = vld [vmem:[%s899_s2 + $0x28] sm:$0xff]  ;;  %s762_s2 = smov 32  }
  0x12   :  { %726 = vmatprep.subr.bf16.mxu0 %v725_v32 }
  0x15   :  { %728 = vmatpush3.bf16.msra.mxu0 %v725_v32 }
  0x16   :  { %730 = vmatprep.subr.bf16.mxu0 %v729_v35 }
  0x19   :  { %732 = vmatpush3.bf16.msra.mxu0 %v729_v35 }
  0xdf   :  { %v660_v17 = vpop.f32.mrb[0].mxu0 }
  0xe0   :  { %v818_v18 = vpop.f32.mrb[1].mxu0  ;;  %v385_v19 = vmul.f32 %v660_v17, %v660_v17 }
  0xe1   :  { %669 = vmatprep.mubr.msk.f32.mxu1 %vm37_vm0, %v818_v18  ;;  %v384_v20 = vmul.f32 %v818_v18, %v818_v18 }
  0xe2   :  { %670 = vmatmul.mubr.msk.f32.vlgmr.msra.gmra.mrb[0].mxu1 %vm37_vm0, %v660_v17  ;;  %v389_v21 = vsel %vm37_vm0, %v385_v19, 0.0 }
  0xe3   :  { %390 = vadd.xlane.f32.xlu0 %v389_v21  ;;  %v386_v22 = vsel %vm37_vm0, %v384_v20, 0.0  ;;  %693 = vmatprep.mubr.msk.f32.mxu1 %vm761_vm2, %v760_v23 }
  0xe4   :  { %387 = vadd.xlane.f32.xlu1 %v386_v22 }
 0x170   :  { %v391_v36 = vpop.xlane.xlu0 %390 }
 0x171   :  { %v393_v37 = vmax.f32 %v391_v36, 1e-24 }
 0x173   :  { %736 = vrsqrt.f32 %v393_v37 }
 0x17d   :  { %v737_v38 = vpop.eup %736 }
 0x17e   :  { %v852_v39 = vmul.f32 %v737_v38, %v660_v17 }
 0x180   :  { %692 = vmatpush3.xpose.msk.msra.mxu1 %vm37_vm0, %v852_v39 }
 0x181   :  { %696 = vmatprep.subr.mxu1 %v760_v23 }
 0x1b5   :  { %v671_v40 = vpop.f32.mrb[0].mxu1 }
 0x1b6   :  { %v228_v41 = vsel %vm200_vm1, %v671_v40, 0.0  ;;  %v235_v42 = vmul.f32 %v671_v40, %v671_v40  ;;  %v191_v43 = vpop.f32.mrb[1].mxu1 }
 0x1b7   :  { %v229_v44 = vrot.slane %v228_v41, 4  ;;  %v201_v45 = vsel %vm200_vm1, %v191_v43, 0.0  ;;  %v208_v46 = vmul.f32 %v191_v43, %v191_v43 }
 0x1b8   :  { %v236_v47 = vsel %vm200_vm1, %v235_v42, 0.0  ;;  %v202_v48 = vrot.slane %v201_v45, 4 }
 0x1b9   :  { %v230_v49 = vadd.f32 %v229_v44, %v228_v41  ;;  %v237_v50 = vrot.slane %v236_v47, 4  ;;  %v209_v51 = vsel %vm200_vm1, %v208_v46, 0.0 }
 0x1ba   :  { %v203_v52 = vadd.f32 %v202_v48, %v201_v45  ;;  %v210_v53 = vrot.slane %v209_v51, 4 }
 0x1bb   :  { %v231_v54 = vrot.slane %v230_v49, 2  ;;  %v238_v55 = vadd.f32 %v237_v50, %v236_v47 }
 0x1bc   :  { %v204_v56 = vrot.slane %v203_v52, 2  ;;  %v211_v57 = vadd.f32 %v210_v53, %v209_v51 }
 0x1bd   :  { %v232_v58 = vadd.f32 %v231_v54, %v230_v49  ;;  %v239_v59 = vrot.slane %v238_v55, 2 }
 0x1be   :  { %v205_v60 = vadd.f32 %v204_v56, %v203_v52  ;;  %v212_v61 = vrot.slane %v211_v57, 2 }
 0x1bf   :  { %v233_v62 = vrot.slane %v232_v58, 1  ;;  %v240_v63 = vadd.f32 %v239_v59, %v238_v55 }
 0x1c0   :  { %v206_v0 = vrot.slane %v205_v60, 1  ;;  %v213_v1 = vadd.f32 %v212_v61, %v211_v57 }
 0x1c1   :  { %v234_v2 = vadd.f32 %v233_v62, %v232_v58  ;;  %v241_v3 = vrot.slane %v240_v63, 1 }
 0x1c2   :  { %v207_v4 = vadd.f32 %v206_v0, %v205_v60  ;;  %v214_v5 = vrot.slane %v213_v1, 1 }
 0x1c3   :  { %v242_v6 = vadd.f32 %v241_v3, %v240_v63  ;;  %v243_v7 = vmul.f32 0.125, %v234_v2 }
 0x1c4   :  { %v215_v8 = vadd.f32 %v214_v5, %v213_v1  ;;  %v216_v9 = vmul.f32 0.125, %v207_v4 }
 0x1c5   :  { %v244_v10 = vmul.f32 0.125, %v242_v6  ;;  %v245_v11 = vmul.f32 %v243_v7, %v243_v7  ;;  %v248_v21 = vsub.f32 %v671_v40, %v243_v7 }
 0x1c6   :  { %v217_v12 = vmul.f32 0.125, %v215_v8  ;;  %v218_v13 = vmul.f32 %v216_v9, %v216_v9  ;;  %v221_v25 = vsub.f32 %v191_v43, %v216_v9 }
 0x1c7   :  { %v246_v14 = vsub.f32 %v244_v10, %v245_v11 }
 0x1c8   :  { %v219_v15 = vsub.f32 %v217_v12, %v218_v13 }
 0x1c9   :  { %v247_v16 = vmax.f32 %v246_v14, 0.0 }
 0x1ca   :  { %v220_v17 = vmax.f32 %v219_v15, 0.0 }
 0x1cb   :  { %v249_v19 = vadd.f32 1e-05, %v247_v16 }
 0x1cc   :  { %v222_v20 = vadd.f32 1e-05, %v220_v17 }
 0x1cd   :  { %738 = vrsqrt.f32 %v249_v19 }
 0x1ce   :  { %740 = vrsqrt.f32 %v222_v20 }
 0x1d7   :  { %v739_v22 = vpop.eup %738 }
 0x1d8   :  { %v741_v26 = vpop.eup %740  ;;  %v251_v27 = vmul.f32 %v739_v22, %v248_v21 }
 0x1d9   :  { %v224_v28 = vmul.f32 %v741_v26, %v221_v25 }
 0x1da   :  { %v252_v30 = vmul.f32 %v251_v27, %v33_v24 }
 0x1db   :  { %v225_v31 = vmul.f32 %v224_v28, %v33_v24 }
 0x1dc   :  { %v253_v32 = vadd.f32 %v252_v30, %v34_v29 }
 0x1dd   :  { %v226_v33 = vadd.f32 %v225_v31, %v34_v29  ;;  %v388_v29 = vpop.xlane.xlu1 %387 }
 0x1de   :  { %v254_v35 = vmax.f32 %v253_v32, 0.0  ;;  %v392_v30 = vmax.f32 %v388_v29, 1e-24 }
 0x1df   :  { %v227_v34 = vmax.f32 %v226_v33, 0.0 }
 0x1e1   :  { %688 = vmatprep.mubr.msk.f32.mxu0 %vm200_vm1, %v227_v34 }
 0x1e2   :  { %689 = vmatmul.mubr.msk.f32.vlgmr.msra.gmra.mrb[2].mxu0 %vm200_vm1, %v254_v35 }
 0x2b5   :  { %v690_v36 = vpop.f32.mrb[2].mxu0 }
 0x2b6   :  { %v360_v37 = vsel %vm37_vm0, %v690_v36, 0.0  ;;  %v367_v38 = vmul.f32 %v690_v36, %v690_v36  ;;  %v327_v40 = vpop.f32.mrb[3].mxu0 }
 0x2b7   :  { %v361_v41 = vrot.slane %v360_v37, 4  ;;  %v336_v42 = vsel %vm37_vm0, %v327_v40, 0.0  ;;  %v343_v43 = vmul.f32 %v327_v40, %v327_v40 }
 0x2b8   :  { %v368_v44 = vsel %vm37_vm0, %v367_v38, 0.0  ;;  %v337_v45 = vrot.slane %v336_v42, 4 }
 0x2b9   :  { %v362_v46 = vadd.f32 %v361_v41, %v360_v37  ;;  %v369_v47 = vrot.slane %v368_v44, 4  ;;  %v344_v48 = vsel %vm37_vm0, %v343_v43, 0.0 }
 0x2ba   :  { %v338_v49 = vadd.f32 %v337_v45, %v336_v42  ;;  %v345_v50 = vrot.slane %v344_v48, 4 }
 0x2bb   :  { %v363_v51 = vrot.slane %v362_v46, 2  ;;  %v370_v52 = vadd.f32 %v369_v47, %v368_v44 }
 0x2bc   :  { %v339_v53 = vrot.slane %v338_v49, 2  ;;  %v346_v54 = vadd.f32 %v345_v50, %v344_v48 }
 0x2bd   :  { %v364_v55 = vadd.f32 %v363_v51, %v362_v46  ;;  %v371_v56 = vrot.slane %v370_v52, 2 }
 0x2be   :  { %v340_v57 = vadd.f32 %v339_v53, %v338_v49  ;;  %v347_v58 = vrot.slane %v346_v54, 2 }
 0x2bf   :  { %v365_v59 = vrot.slane %v364_v55, 1  ;;  %v372_v60 = vadd.f32 %v371_v56, %v370_v52 }
 0x2c0   :  { %v341_v61 = vrot.slane %v340_v57, 1  ;;  %v348_v62 = vadd.f32 %v347_v58, %v346_v54 }
 0x2c1   :  { %v366_v63 = vadd.f32 %v365_v59, %v364_v55  ;;  %v373_v0 = vrot.slane %v372_v60, 1 }
 0x2c2   :  { %v342_v1 = vadd.f32 %v341_v61, %v340_v57  ;;  %v349_v2 = vrot.slane %v348_v62, 1 }
 0x2c3   :  { %v374_v3 = vadd.f32 %v373_v0, %v372_v60  ;;  %v375_v4 = vmul.f32 0.125, %v366_v63 }
 0x2c4   :  { %v350_v5 = vadd.f32 %v349_v2, %v348_v62  ;;  %v351_v6 = vmul.f32 0.125, %v342_v1 }
 0x2c5   :  { %v376_v7 = vmul.f32 0.125, %v374_v3  ;;  %v377_v8 = vmul.f32 %v375_v4, %v375_v4  ;;  %v380_v17 = vsub.f32 %v690_v36, %v375_v4 }
 0x2c6   :  { %v352_v9 = vmul.f32 0.125, %v350_v5  ;;  %v353_v10 = vmul.f32 %v351_v6, %v351_v6  ;;  %v356_v20 = vsub.f32 %v327_v40, %v351_v6 }
 0x2c7   :  { %v378_v11 = vsub.f32 %v376_v7, %v377_v8 }
 0x2c8   :  { %v354_v12 = vsub.f32 %v352_v9, %v353_v10 }
 0x2c9   :  { %v379_v13 = vmax.f32 %v378_v11, 0.0 }
 0x2ca   :  { %v355_v14 = vmax.f32 %v354_v12, 0.0 }
 0x2cb   :  { %v381_v15 = vadd.f32 1e-05, %v379_v13 }
 0x2cc   :  { %v357_v16 = vadd.f32 1e-05, %v355_v14 }
 0x2cd   :  { %742 = vrsqrt.f32 %v381_v15 }
 0x2ce   :  { %744 = vrsqrt.f32 %v357_v16 }
 0x2cf   :  { %746 = vrsqrt.f32 %v392_v30 }
 0x2d7   :  { %v743_v19 = vpop.eup %742 }
 0x2d8   :  { %v745_v21 = vpop.eup %744  ;;  %v383_v22 = vmul.f32 %v743_v19, %v380_v17 }
 0x2d9   :  { %v873_v24 = vmul.f32 %v745_v21, %v356_v20  ;;  %v747_v35 = vpop.eup %746 }
 0x2da   :  { %v405_v25 = vmul.f32 %v383_v22, %v383_v22  ;;  %v396_v38 = vmul.f32 %v747_v35, %v818_v18 }
 0x2db   :  { %v398_v26 = vmul.f32 %v873_v24, %v873_v24 }
 0x2dc   :  { %v406_v27 = vsel %vm37_vm0, %v405_v25, 0.0 }
 0x2dd   :  { %407 = vadd.xlane.f32.xlu1 %v406_v27  ;;  %v399_v28 = vsel %vm37_vm0, %v398_v26, 0.0 }
 0x2de   :  { %400 = vadd.xlane.f32.xlu0 %v399_v28 }
 0x36a   :  { %v408_v31 = vpop.xlane.xlu1 %407 }
 0x36b   :  { %v409_v32 = vmax.f32 %v408_v31, 1e-24  ;;  %v401_v33 = vpop.xlane.xlu0 %400 }
 0x36c   :  { %v402_v34 = vmax.f32 %v401_v33, 1e-24 }
 0x36d   :  { %748 = vrsqrt.f32 %v409_v32 }
 0x36e   :  { %750 = vrsqrt.f32 %v402_v34 }
 0x377   :  { %v749_v36 = vpop.eup %748 }
 0x378   :  { %v751_v37 = vpop.eup %750  ;;  %v411_v40 = vmul.f32 %v749_v36, %v383_v22 }
 0x379   :  { %v404_v41 = vmul.f32 %v751_v37, %v873_v24 }
 0x37a   :  { %v583_v42 = vmul.f32 %v411_v40, %v396_v38 }
 0x37b   :  { %694 = vmatmul.mubr.msk.f32.vlgmr.msra.gmra.mrb[2].mxu1 %vm37_vm0, %v404_v41  ;;  %v488_v50 = vmul.f32 %v404_v41, %v852_v39 }
 0x37c   :  { %697 = vmatpush3.xpose.msk.msra.mxu1 %vm37_vm0, %v396_v38  ;;  %698 = vmatprep.mubr.msk.f32.mxu1 %vm761_vm2, %v760_v23  ;;  %v584_v53 = vsel %vm37_vm0, %v583_v42, 0.0 }
 0x37d   :  { %v489_v52 = vsel %vm37_vm0, %v488_v50, 0.0 }
 0x37f   :  { %699 = vmatmul.mubr.msk.f32.vlgmr.msra.gmra.mrb[4].mxu1 %vm37_vm0, %v411_v40 }
 0x44e   :  { %v484_v43 = vpop.f32.mrb[2].mxu1 }
 0x44f   :  { %v492_v44 = vmul.f32 1.442695, %v484_v43  ;;  %v695_v45 = vpop.f32.mrb[3].mxu1 }
 0x451   :  { %752 = vpow2.f32 %v492_v44 }
 0x452   :  { %v579_v46 = vpop.f32.mrb[4].mxu1 }
 0x453   :  { %v587_v47 = vmul.f32 1.442695, %v579_v46  ;;  %v700_v18 = vpop.f32.mrb[5].mxu1 }
 0x455   :  { %754 = vpow2.f32 %v587_v47 }
 0x45b   :  { %v753_v48 = vpop.eup %752 }
 0x45c   :  { %v495_v49 = vsel %vm494_vm3, %v753_v48, 0.0 }
 0x45d   :  { %496 = vadd.xlane.f32.xlu0 %v495_v49 }
 0x45f   :  { %v755_v51 = vpop.eup %754 }
 0x460   :  { %v589_v23 = vsel %vm494_vm3, %v755_v51, 0.0 }
 0x461   :  { %490 = vadd.xlane.f32.xlu0 %v489_v52  ;;  %590 = vadd.xlane.f32.xlu1 %v589_v23 }
 0x465   :  { %585 = vadd.xlane.f32.xlu1 %v584_v53 }
 0x477   :  { %604 = vrot.lane.b32.xlu0 %v383_v22, %s762_s2 }
 0x4ea   :  { %v497_v54 = vpop.xlane.xlu0 %496 }
 0x4eb   :  { %756 = vlog2.f32 %v497_v54 }
 0x4ee   :  { %v591_v55 = vpop.xlane.xlu1 %590  ;;  %v491_v58 = vpop.xlane.xlu0 %490 }
 0x4ef   :  { %758 = vlog2.f32 %v591_v55 }
 0x4f2   :  { %v586_v62 = vpop.xlane.xlu1 %585  ;;  %v605_v11 = vpop.permute.xlu0 %604 }
 0x4f3   :  { %v607_v14 = vsel %vm37_vm0, %v873_v24, %v605_v11 }
 0x4f5   :  { %v757_v56 = vpop.eup %756 }
 0x4f6   :  { %v499_v57 = vmul.f32 0.6931472, %v757_v56 }
 0x4f8   :  { %v500_v39 = vsub.f32 %v499_v57, %v491_v58 }
 0x4f9   :  { %v759_v59 = vpop.eup %758 }
 0x4fa   :  { %v501_v60 = vrot.slane %v500_v39, 4  ;;  %v593_v61 = vmul.f32 0.6931472, %v759_v59 }
 0x4fc   :  { %v502_v63 = vadd.f32 %v501_v60, %v500_v39  ;;  %v594_v0 = vsub.f32 %v593_v61, %v586_v62 }
 0x4fe   :  { %v503_v1 = vrot.slane %v502_v63, 2  ;;  %v595_v2 = vrot.slane %v594_v0, 4 }
 0x500   :  { %v504_v3 = vadd.f32 %v503_v1, %v502_v63  ;;  %v596_v4 = vadd.f32 %v595_v2, %v594_v0 }
 0x502   :  { %v597_v5 = vrot.slane %v596_v4, 2  ;;  %v505_v6 = vrot.slane %v504_v3, 1 }
 0x504   :  { %v598_v7 = vadd.f32 %v597_v5, %v596_v4  ;;  %v506_v9 = vadd.f32 %v505_v6, %v504_v3 }
 0x506   :  { %v599_v8 = vrot.slane %v598_v7, 1 }
 0x508   :  { %v600_v10 = vadd.f32 %v599_v8, %v598_v7 }
 0x50a   :  { %v601_v12 = vadd.f32 %v600_v10, %v506_v9 }
 0x50c   :  { %v602_v13 = vmul.f32 0.25, %v601_v12 }
 0x50e   :  { %v608_v15 = vsel %vm200_vm1, %v607_v14, %v602_v13 }
 0x50f   :  { %609 = vst [vmem:[%s900_s3] sm:$0xff] %v608_v15 }

</bundles_post_ra>
